<compile_context>
chip_gen: v7x
topology: tpu7x:2x2x1
jax: 0.10.0
libtpu: 0.0.40
codegen_flags: <defaults>
</compile_context>

<pallas_src>
import functools

import jax
import jax.numpy as jnp
from jax.experimental import pallas as pl
from jax.experimental.pallas import tpu as pltpu

HIDDEN = 64


def gru_kernel(x_ref, wih_rz_ref, wih_n_ref, whh_ref, bi_rz_ref, bi_n_ref,
               bhn_ref, wout_ref, bout_ref, out_ref,
               girz_ref, ginh_ref, *, seq_len, batch_pad):
    T = seq_len
    Bp = batch_pad
    H = wih_n_ref.shape[-1]

    # ---- hoisted, time-independent input projections (fused r|z + n) ----
    x2 = x_ref[...]                                                    # (T*Bp, I)
    girz_ref[...] = (jnp.dot(x2, wih_rz_ref[...],
                             preferred_element_type=jnp.float32)
                     + bi_rz_ref[...])           # [W_ir x + b_ir + b_hr | W_iz x + b_iz + b_hz]
    ginh_ref[...] = (jnp.dot(x2, wih_n_ref[...],
                             preferred_element_type=jnp.float32)
                     + bi_n_ref[...])            # W_in x + b_in   (slab later aliased to h)

    # ---- hoisted recurrent weights / bias broadcast (kept out of the loop) ----
    whh_fused = whh_ref[...]                                           # (H, 3H) = [r|z|n]
    bhn = jnp.broadcast_to(bhn_ref[...], (Bp, H))                      # (Bp, H)

    # ---- sequential recurrence: ONE fused MXU push + ONE sigmoid per step ----
    def step(t, h):
        row0 = pl.multiple_of(t * Bp, Bp)                              # tile-aligned
        rows = pl.ds(row0, Bp)
        gi_rz = girz_ref[rows, :]                                      # (Bp, 2H)
        gi_n = ginh_ref[rows, :]                                       # (Bp, H)
        hh = jnp.dot(h, whh_fused, preferred_element_type=jnp.float32)  # (Bp, 3H)
        rz = jax.nn.sigmoid(gi_rz + hh[:, : 2 * H])                    # fused r|z, one EUP pass
        r = rz[:, :H]
        z = rz[:, H:]
        n = jnp.tanh(gi_n + r * (hh[:, 2 * H:] + bhn))
        h_new = (1.0 - z) * n + z * h
        ginh_ref[rows, :] = h_new                                      # alias: gi_n[t] dead now
        return h_new

    h0 = jnp.zeros((Bp, H), jnp.float32)
    unroll = T if T <= 16 else 8                                       # cap unroll for large T
    jax.lax.fori_loop(0, T, step, h0, unroll=unroll)

    # ---- hoisted output head: one (T*Bp, H) @ (H, 1) matmul, single store ----
    y = (jnp.dot(ginh_ref[...], wout_ref[...],
                 preferred_element_type=jnp.float32) + bout_ref[...])
    out_ref[...] = y.astype(out_ref.dtype)


def rnn_forward(x, params):
    """x: (B, T, I) float32 -> (B, T, 1) float32 (matches RNN.forward in PyTorch)."""
    W_ih, W_hh, b_ih, b_hh, W_out, b_out = params
    B, T, I = x.shape
    H = HIDDEN
    Bp = ((B + 7) // 8) * 8            # pad batch to a full sublane tile

    # gate-separated, pre-transposed weights; r|z fused lane-dense, all 3 fused for W_hh
    wih = W_ih.reshape(3, H, I).transpose(0, 2, 1)        # (3, I, H): [r, z, n]
    whh = W_hh.reshape(3, H, H).transpose(0, 2, 1)        # (3, H, H)
    wih_rz = jnp.concatenate([wih[0], wih[1]], axis=-1)   # (I, 2H)
    wih_n = wih[2]                                        # (I, H)
    whh_fused = jnp.concatenate([whh[0], whh[1], whh[2]], axis=-1)   # (H, 3H)

    b_i = b_ih.reshape(3, H)
    b_h = b_hh.reshape(3, H)
    bi_rz = jnp.concatenate([b_i[0] + b_h[0],             # fold b_ih+b_hh for r,z
                             b_i[1] + b_h[1]]).reshape(1, 2 * H)
    bi_n = b_i[2].reshape(1, H)
    bhn = b_h[2].reshape(1, H)                            # b_hn stays inside r*(...)
    wout_t = W_out.T                                      # (H, 1)
    bout = b_out.reshape(1, 1)

    # time-major, batch padded, flattened to (T*Bp, I) — tiny HBM-side prep
    x_tm = jnp.transpose(x, (1, 0, 2))                    # (T, B, I)
    if Bp != B:
        x_tm = jnp.pad(x_tm, ((0, 0), (0, Bp - B), (0, 0)))
    x2 = x_tm.reshape(T * Bp, I)

    kernel = functools.partial(gru_kernel, seq_len=T, batch_pad=Bp)

    out2 = pl.pallas_call(
        kernel,
        out_shape=jax.ShapeDtypeStruct((T * Bp, 1), x.dtype),
        grid=(1,),
        in_specs=[
            pl.BlockSpec((T * Bp, I), lambda i: (0, 0)),      # x2
            pl.BlockSpec((I, 2 * H), lambda i: (0, 0)),       # wih_rz
            pl.BlockSpec((I, H), lambda i: (0, 0)),           # wih_n
            pl.BlockSpec((H, 3 * H), lambda i: (0, 0)),       # whh fused
            pl.BlockSpec((1, 2 * H), lambda i: (0, 0)),       # bi_rz
            pl.BlockSpec((1, H), lambda i: (0, 0)),           # bi_n
            pl.BlockSpec((1, H), lambda i: (0, 0)),           # bhn
            pl.BlockSpec((H, 1), lambda i: (0, 0)),           # wout
            pl.BlockSpec((1, 1), lambda i: (0, 0)),           # bout
        ],
        out_specs=pl.BlockSpec((T * Bp, 1), lambda i: (0, 0)),
        scratch_shapes=[
            pltpu.VMEM((T * Bp, 2 * H), jnp.float32),         # gi_rz slab
            pltpu.VMEM((T * Bp, H), jnp.float32),             # gi_n slab, aliased to h_all
        ],
        compiler_params=pltpu.CompilerParams(dimension_semantics=("arbitrary",)),
    )(x2, wih_rz, wih_n, whh_fused, bi_rz, bi_n, bhn, wout_t, bout)

    y = out2.reshape(T, Bp, 1)[:, :B, :]                  # (T, B, 1)
    return jnp.transpose(y, (1, 0, 2))                    # (B, T, 1)


def rnn_ref(x, params):
    """Pure-JAX reference of PyTorch GRU(batch_first) + Linear(64,1)."""
    W_ih, W_hh, b_ih, b_hh, W_out, b_out = params
    B, T, I = x.shape
    H = HIDDEN

    def step(h, x_t):
        gi = x_t @ W_ih.T + b_ih
        gh = h @ W_hh.T + b_hh
        i_r, i_z, i_n = jnp.split(gi, 3, axis=-1)
        h_r, h_z, h_n = jnp.split(gh, 3, axis=-1)
        r = jax.nn.sigmoid(i_r + h_r)
        z = jax.nn.sigmoid(i_z + h_z)
        n = jnp.tanh(i_n + r * h_n)
        h_new = (1.0 - z) * n + z * h
        return h_new, h_new

    h0 = jnp.zeros((B, H), x.dtype)
    _, hs = jax.lax.scan(step, h0, jnp.transpose(x, (1, 0, 2)))
    r_out = jnp.transpose(hs, (1, 0, 2))                  # (B, T, H)
    return r_out @ W_out.T + b_out                        # (B, T, 1)


def init_params(key, input_size):
    """Deterministic init mimicking PyTorch default uniform(-1/sqrt(fan), 1/sqrt(fan))."""
    H = HIDDEN
    k = jax.random.split(key, 6)
    s_gru = 1.0 / jnp.sqrt(jnp.float32(H))
    s_lin = 1.0 / jnp.sqrt(jnp.float32(H))
    W_ih = jax.random.uniform(k[0], (3 * H, input_size), jnp.float32, -s_gru, s_gru)
    W_hh = jax.random.uniform(k[1], (3 * H, H), jnp.float32, -s_gru, s_gru)
    b_ih = jax.random.uniform(k[2], (3 * H,), jnp.float32, -s_gru, s_gru)
    b_hh = jax.random.uniform(k[3], (3 * H,), jnp.float32, -s_gru, s_gru)
    W_out = jax.random.uniform(k[4], (1, H), jnp.float32, -s_lin, s_lin)
    b_out = jax.random.uniform(k[5], (1,), jnp.float32, -s_lin, s_lin)
    return (W_ih, W_hh, b_ih, b_hh, W_out, b_out)


if __name__ == "__main__":
    B, T, I = 2, 8, 16
    key = jax.random.PRNGKey(0)
    k_x, k_p = jax.random.split(key)
    x = jax.random.normal(k_x, (B, T, I), jnp.float32)
    params = init_params(k_p, I)

    out = jax.block_until_ready(rnn_forward(x, params))
    ref = jax.block_until_ready(rnn_ref(x, params))

    assert out.shape == (B, T, 1), out.shape
    assert jnp.allclose(out, ref, atol=1e-5, rtol=1e-5), float(jnp.max(jnp.abs(out - ref)))
    print("KERNEL_OK")
</pallas_src>

<mosaic_0001>
module attributes {stable_mosaic.version = 11 : i64} {
  func.func @gru_kernel(%arg0: i32, %arg1: memref<64x16xf32, #tpu.memory_space<vmem>>, %arg2: memref<16x128xf32, #tpu.memory_space<vmem>>, %arg3: memref<16x64xf32, #tpu.memory_space<vmem>>, %arg4: memref<64x192xf32, #tpu.memory_space<vmem>>, %arg5: memref<1x128xf32, #tpu.memory_space<vmem>>, %arg6: memref<1x64xf32, #tpu.memory_space<vmem>>, %arg7: memref<1x64xf32, #tpu.memory_space<vmem>>, %arg8: memref<64x1xf32, #tpu.memory_space<vmem>>, %arg9: memref<1x1xf32, #tpu.memory_space<vmem>>, %arg10: memref<64x1xf32, #tpu.memory_space<vmem>>, %arg11: memref<64x128xf32, #tpu.memory_space<vmem>>, %arg12: memref<64x64xf32, #tpu.memory_space<vmem>>) attributes {dimension_semantics = [#tpu.dimension_semantics<arbitrary>], iteration_bounds = array<i64: 1>, scalar_prefetch = 0 : i64, scratch_operands = 2 : i64, tpu.core_type = #tpu.core_type<tc>, window_params = [{pipeline_mode = #tpu.pipeline_mode<synchronous>, transform_indices = @transform_0, window_bounds = array<i64: 64, 16>}, {pipeline_mode = #tpu.pipeline_mode<synchronous>, transform_indices = @transform_1, window_bounds = array<i64: 16, 128>}, {pipeline_mode = #tpu.pipeline_mode<synchronous>, transform_indices = @transform_2, window_bounds = array<i64: 16, 64>}, {pipeline_mode = #tpu.pipeline_mode<synchronous>, transform_indices = @transform_3, window_bounds = array<i64: 64, 192>}, {pipeline_mode = #tpu.pipeline_mode<synchronous>, transform_indices = @transform_4, window_bounds = array<i64: 1, 128>}, {pipeline_mode = #tpu.pipeline_mode<synchronous>, transform_indices = @transform_5, window_bounds = array<i64: 1, 64>}, {pipeline_mode = #tpu.pipeline_mode<synchronous>, transform_indices = @transform_6, window_bounds = array<i64: 1, 64>}, {pipeline_mode = #tpu.pipeline_mode<synchronous>, transform_indices = @transform_7, window_bounds = array<i64: 64, 1>}, {pipeline_mode = #tpu.pipeline_mode<synchronous>, transform_indices = @transform_8, window_bounds = array<i64: 1, 1>}, {pipeline_mode = #tpu.pipeline_mode<synchronous>, transform_indices = @transform_9, window_bounds = array<i64: 64, 1>}]} {
    %c0 = arith.constant 0 : index
    %c0_0 = arith.constant 0 : index
    %0 = vector.load %arg1[%c0, %c0_0] : memref<64x16xf32, #tpu.memory_space<vmem>>, vector<64x16xf32>
    %c0_1 = arith.constant 0 : index
    %c0_2 = arith.constant 0 : index
    %1 = vector.load %arg2[%c0_1, %c0_2] : memref<16x128xf32, #tpu.memory_space<vmem>>, vector<16x128xf32>
    %cst = arith.constant dense<0.000000e+00> : vector<64x128xf32>
    %2 = tpu.matmul %0, %1, %cst {dimension_numbers = #tpu.dot_dimension_numbers<[1], [0], [0], [1], [0, 0, 1, 1], [], []>} : vector<64x16xf32>, vector<16x128xf32>, vector<64x128xf32> -> vector<64x128xf32>
    %c0_3 = arith.constant 0 : index
    %c0_4 = arith.constant 0 : index
    %3 = vector.load %arg5[%c0_3, %c0_4] : memref<1x128xf32, #tpu.memory_space<vmem>>, vector<1x128xf32>
    %4 = vector.broadcast %3 : vector<1x128xf32> to vector<64x128xf32>
    %5 = arith.addf %2, %4 : vector<64x128xf32>
    %c0_5 = arith.constant 0 : index
    %c0_6 = arith.constant 0 : index
    %6 = vector.load %arg11[%c0_5, %c0_6] : memref<64x128xf32, #tpu.memory_space<vmem>>, vector<64x128xf32>
    tpu.vector_store %arg11[%c0_5, %c0_6], %5 {strides = array<i32>} : memref<64x128xf32, #tpu.memory_space<vmem>>, vector<64x128xf32>,
    %c0_7 = arith.constant 0 : index
    %c0_8 = arith.constant 0 : index
    %7 = vector.load %arg3[%c0_7, %c0_8] : memref<16x64xf32, #tpu.memory_space<vmem>>, vector<16x64xf32>
    %cst_9 = arith.constant dense<0.000000e+00> : vector<64x64xf32>
    %8 = tpu.matmul %0, %7, %cst_9 {dimension_numbers = #tpu.dot_dimension_numbers<[1], [0], [0], [1], [0, 0, 1, 1], [], []>} : vector<64x16xf32>, vector<16x64xf32>, vector<64x64xf32> -> vector<64x64xf32>
    %c0_10 = arith.constant 0 : index
    %c0_11 = arith.constant 0 : index
    %9 = vector.load %arg6[%c0_10, %c0_11] : memref<1x64xf32, #tpu.memory_space<vmem>>, vector<1x64xf32>
    %10 = vector.broadcast %9 : vector<1x64xf32> to vector<64x64xf32>
    %11 = arith.addf %8, %10 : vector<64x64xf32>
    %c0_12 = arith.constant 0 : index
    %c0_13 = arith.constant 0 : index
    %12 = vector.load %arg12[%c0_12, %c0_13] : memref<64x64xf32, #tpu.memory_space<vmem>>, vector<64x64xf32>
    tpu.vector_store %arg12[%c0_12, %c0_13], %11 {strides = array<i32>} : memref<64x64xf32, #tpu.memory_space<vmem>>, vector<64x64xf32>,
    %c0_14 = arith.constant 0 : index
    %c0_15 = arith.constant 0 : index
    %13 = vector.load %arg4[%c0_14, %c0_15] : memref<64x192xf32, #tpu.memory_space<vmem>>, vector<64x192xf32>
    %c0_16 = arith.constant 0 : index
    %c0_17 = arith.constant 0 : index
    %14 = vector.load %arg7[%c0_16, %c0_17] : memref<1x64xf32, #tpu.memory_space<vmem>>, vector<1x64xf32>
    %15 = vector.shape_cast %14 : vector<1x64xf32> to vector<1x64xf32>
    %16 = vector.broadcast %15 : vector<1x64xf32> to vector<8x64xf32>
    %cst_18 = arith.constant 0.000000e+00 : f32
    %17 = vector.broadcast %cst_18 : f32 to vector<8x64xf32>
    %c0_i32 = arith.constant 0 : i32
    %c8_i32 = arith.constant 8 : i32
    %18 = arith.muli %c0_i32, %c8_i32 : i32
    %19 = tpu.assume_multiple %18, 8 : i32
    %20 = arith.index_cast %19 : i32 to index
    %c0_19 = arith.constant 0 : index
    %21 = vector.load %arg11[%20, %c0_19] : memref<64x128xf32, #tpu.memory_space<vmem>>, vector<8x128xf32>
    %22 = arith.index_cast %19 : i32 to index
    %c0_20 = arith.constant 0 : index
    %23 = vector.load %arg12[%22, %c0_20] : memref<64x64xf32, #tpu.memory_space<vmem>>, vector<8x64xf32>
    %cst_21 = arith.constant dense<0.000000e+00> : vector<8x192xf32>
    %24 = tpu.matmul %17, %13, %cst_21 {dimension_numbers = #tpu.dot_dimension_numbers<[1], [0], [0], [1], [0, 0, 1, 1], [], []>} : vector<8x64xf32>, vector<64x192xf32>, vector<8x192xf32> -> vector<8x192xf32>
    %25 = vector.extract_strided_slice %24 {offsets = [0, 0], sizes = [8, 128], strides = [1, 1]} : vector<8x192xf32> to vector<8x128xf32>
    %26 = arith.addf %21, %25 : vector<8x128xf32>
    %27 = arith.negf %26 : vector<8x128xf32>
    %28 = math.exp %27 : vector<8x128xf32>
    %cst_22 = arith.constant 1.000000e+00 : f32
    %29 = vector.broadcast %cst_22 : f32 to vector<8x128xf32>
    %30 = arith.addf %29, %28 : vector<8x128xf32>
    %31 = arith.divf %29, %30 : vector<8x128xf32>
    %32 = vector.extract_strided_slice %31 {offsets = [0, 0], sizes = [8, 64], strides = [1, 1]} : vector<8x128xf32> to vector<8x64xf32>
    %33 = vector.extract_strided_slice %31 {offsets = [0, 64], sizes = [8, 64], strides = [1, 1]} : vector<8x128xf32> to vector<8x64xf32>
    %34 = vector.extract_strided_slice %24 {offsets = [0, 128], sizes = [8, 64], strides = [1, 1]} : vector<8x192xf32> to vector<8x64xf32>
    %35 = arith.addf %34, %16 : vector<8x64xf32>
    %36 = arith.mulf %32, %35 : vector<8x64xf32>
    %37 = arith.addf %23, %36 : vector<8x64xf32>
    %38 = math.tanh %37 : vector<8x64xf32>
    %cst_23 = arith.constant 1.000000e+00 : f32
    %39 = vector.broadcast %cst_23 : f32 to vector<8x64xf32>
    %40 = arith.subf %39, %33 : vector<8x64xf32>
    %41 = arith.mulf %40, %38 : vector<8x64xf32>
    %42 = arith.mulf %33, %17 : vector<8x64xf32>
    %43 = arith.addf %41, %42 : vector<8x64xf32>
    %44 = arith.index_cast %19 : i32 to index
    %c0_24 = arith.constant 0 : index
    %45 = vector.load %arg12[%44, %c0_24] : memref<64x64xf32, #tpu.memory_space<vmem>>, vector<8x64xf32>
    tpu.vector_store %arg12[%44, %c0_24], %43 {strides = array<i32>} : memref<64x64xf32, #tpu.memory_space<vmem>>, vector<8x64xf32>,
    %c1_i32 = arith.constant 1 : i32
    %c8_i32_25 = arith.constant 8 : i32
    %46 = arith.muli %c1_i32, %c8_i32_25 : i32
    %47 = tpu.assume_multiple %46, 8 : i32
    %48 = arith.index_cast %47 : i32 to index
    %c0_26 = arith.constant 0 : index
    %49 = vector.load %arg11[%48, %c0_26] : memref<64x128xf32, #tpu.memory_space<vmem>>, vector<8x128xf32>
    %50 = arith.index_cast %47 : i32 to index
    %c0_27 = arith.constant 0 : index
    %51 = vector.load %arg12[%50, %c0_27] : memref<64x64xf32, #tpu.memory_space<vmem>>, vector<8x64xf32>
    %cst_28 = arith.constant dense<0.000000e+00> : vector<8x192xf32>
    %52 = tpu.matmul %43, %13, %cst_28 {dimension_numbers = #tpu.dot_dimension_numbers<[1], [0], [0], [1], [0, 0, 1, 1], [], []>} : vector<8x64xf32>, vector<64x192xf32>, vector<8x192xf32> -> vector<8x192xf32>
    %53 = vector.extract_strided_slice %52 {offsets = [0, 0], sizes = [8, 128], strides = [1, 1]} : vector<8x192xf32> to vector<8x128xf32>
    %54 = arith.addf %49, %53 : vector<8x128xf32>
    %55 = arith.negf %54 : vector<8x128xf32>
    %56 = math.exp %55 : vector<8x128xf32>
    %cst_29 = arith.constant 1.000000e+00 : f32
    %57 = vector.broadcast %cst_29 : f32 to vector<8x128xf32>
    %58 = arith.addf %57, %56 : vector<8x128xf32>
    %59 = arith.divf %57, %58 : vector<8x128xf32>
    %60 = vector.extract_strided_slice %59 {offsets = [0, 0], sizes = [8, 64], strides = [1, 1]} : vector<8x128xf32> to vector<8x64xf32>
    %61 = vector.extract_strided_slice %59 {offsets = [0, 64], sizes = [8, 64], strides = [1, 1]} : vector<8x128xf32> to vector<8x64xf32>
    %62 = vector.extract_strided_slice %52 {offsets = [0, 128], sizes = [8, 64], strides = [1, 1]} : vector<8x192xf32> to vector<8x64xf32>
    %63 = arith.addf %62, %16 : vector<8x64xf32>
    %64 = arith.mulf %60, %63 : vector<8x64xf32>
    %65 = arith.addf %51, %64 : vector<8x64xf32>
    %66 = math.tanh %65 : vector<8x64xf32>
    %cst_30 = arith.constant 1.000000e+00 : f32
    %67 = vector.broadcast %cst_30 : f32 to vector<8x64xf32>
    %68 = arith.subf %67, %61 : vector<8x64xf32>
    %69 = arith.mulf %68, %66 : vector<8x64xf32>
    %70 = arith.mulf %61, %43 : vector<8x64xf32>
    %71 = arith.addf %69, %70 : vector<8x64xf32>
    %72 = arith.index_cast %47 : i32 to index
    %c0_31 = arith.constant 0 : index
    %73 = vector.load %arg12[%72, %c0_31] : memref<64x64xf32, #tpu.memory_space<vmem>>, vector<8x64xf32>
    tpu.vector_store %arg12[%72, %c0_31], %71 {strides = array<i32>} : memref<64x64xf32, #tpu.memory_space<vmem>>, vector<8x64xf32>,
    %c2_i32 = arith.constant 2 : i32
    %c8_i32_32 = arith.constant 8 : i32
    %74 = arith.muli %c2_i32, %c8_i32_32 : i32
    %75 = tpu.assume_multiple %74, 8 : i32
    %76 = arith.index_cast %75 : i32 to index
    %c0_33 = arith.constant 0 : index
    %77 = vector.load %arg11[%76, %c0_33] : memref<64x128xf32, #tpu.memory_space<vmem>>, vector<8x128xf32>
    %78 = arith.index_cast %75 : i32 to index
    %c0_34 = arith.constant 0 : index
    %79 = vector.load %arg12[%78, %c0_34] : memref<64x64xf32, #tpu.memory_space<vmem>>, vector<8x64xf32>
    %cst_35 = arith.constant dense<0.000000e+00> : vector<8x192xf32>
    %80 = tpu.matmul %71, %13, %cst_35 {dimension_numbers = #tpu.dot_dimension_numbers<[1], [0], [0], [1], [0, 0, 1, 1], [], []>} : vector<8x64xf32>, vector<64x192xf32>, vector<8x192xf32> -> vector<8x192xf32>
    %81 = vector.extract_strided_slice %80 {offsets = [0, 0], sizes = [8, 128], strides = [1, 1]} : vector<8x192xf32> to vector<8x128xf32>
    %82 = arith.addf %77, %81 : vector<8x128xf32>
    %83 = arith.negf %82 : vector<8x128xf32>
    %84 = math.exp %83 : vector<8x128xf32>
    %cst_36 = arith.constant 1.000000e+00 : f32
    %85 = vector.broadcast %cst_36 : f32 to vector<8x128xf32>
    %86 = arith.addf %85, %84 : vector<8x128xf32>
    %87 = arith.divf %85, %86 : vector<8x128xf32>
    %88 = vector.extract_strided_slice %87 {offsets = [0, 0], sizes = [8, 64], strides = [1, 1]} : vector<8x128xf32> to vector<8x64xf32>
    %89 = vector.extract_strided_slice %87 {offsets = [0, 64], sizes = [8, 64], strides = [1, 1]} : vector<8x128xf32> to vector<8x64xf32>
    %90 = vector.extract_strided_slice %80 {offsets = [0, 128], sizes = [8, 64], strides = [1, 1]} : vector<8x192xf32> to vector<8x64xf32>
    %91 = arith.addf %90, %16 : vector<8x64xf32>
    %92 = arith.mulf %88, %91 : vector<8x64xf32>
    %93 = arith.addf %79, %92 : vector<8x64xf32>
    %94 = math.tanh %93 : vector<8x64xf32>
    %cst_37 = arith.constant 1.000000e+00 : f32
    %95 = vector.broadcast %cst_37 : f32 to vector<8x64xf32>
    %96 = arith.subf %95, %89 : vector<8x64xf32>
    %97 = arith.mulf %96, %94 : vector<8x64xf32>
    %98 = arith.mulf %89, %71 : vector<8x64xf32>
    %99 = arith.addf %97, %98 : vector<8x64xf32>
    %100 = arith.index_cast %75 : i32 to index
    %c0_38 = arith.constant 0 : index
    %101 = vector.load %arg12[%100, %c0_38] : memref<64x64xf32, #tpu.memory_space<vmem>>, vector<8x64xf32>
    tpu.vector_store %arg12[%100, %c0_38], %99 {strides = array<i32>} : memref<64x64xf32, #tpu.memory_space<vmem>>, vector<8x64xf32>,
    %c3_i32 = arith.constant 3 : i32
    %c8_i32_39 = arith.constant 8 : i32
    %102 = arith.muli %c3_i32, %c8_i32_39 : i32
    %103 = tpu.assume_multiple %102, 8 : i32
    %104 = arith.index_cast %103 : i32 to index
    %c0_40 = arith.constant 0 : index
    %105 = vector.load %arg11[%104, %c0_40] : memref<64x128xf32, #tpu.memory_space<vmem>>, vector<8x128xf32>
    %106 = arith.index_cast %103 : i32 to index
    %c0_41 = arith.constant 0 : index
    %107 = vector.load %arg12[%106, %c0_41] : memref<64x64xf32, #tpu.memory_space<vmem>>, vector<8x64xf32>
    %cst_42 = arith.constant dense<0.000000e+00> : vector<8x192xf32>
    %108 = tpu.matmul %99, %13, %cst_42 {dimension_numbers = #tpu.dot_dimension_numbers<[1], [0], [0], [1], [0, 0, 1, 1], [], []>} : vector<8x64xf32>, vector<64x192xf32>, vector<8x192xf32> -> vector<8x192xf32>
    %109 = vector.extract_strided_slice %108 {offsets = [0, 0], sizes = [8, 128], strides = [1, 1]} : vector<8x192xf32> to vector<8x128xf32>
    %110 = arith.addf %105, %109 : vector<8x128xf32>
    %111 = arith.negf %110 : vector<8x128xf32>
    %112 = math.exp %111 : vector<8x128xf32>
    %cst_43 = arith.constant 1.000000e+00 : f32
    %113 = vector.broadcast %cst_43 : f32 to vector<8x128xf32>
    %114 = arith.addf %113, %112 : vector<8x128xf32>
    %115 = arith.divf %113, %114 : vector<8x128xf32>
    %116 = vector.extract_strided_slice %115 {offsets = [0, 0], sizes = [8, 64], strides = [1, 1]} : vector<8x128xf32> to vector<8x64xf32>
    %117 = vector.extract_strided_slice %115 {offsets = [0, 64], sizes = [8, 64], strides = [1, 1]} : vector<8x128xf32> to vector<8x64xf32>
    %118 = vector.extract_strided_slice %108 {offsets = [0, 128], sizes = [8, 64], strides = [1, 1]} : vector<8x192xf32> to vector<8x64xf32>
    %119 = arith.addf %118, %16 : vector<8x64xf32>
    %120 = arith.mulf %116, %119 : vector<8x64xf32>
    %121 = arith.addf %107, %120 : vector<8x64xf32>
    %122 = math.tanh %121 : vector<8x64xf32>
    %cst_44 = arith.constant 1.000000e+00 : f32
    %123 = vector.broadcast %cst_44 : f32 to vector<8x64xf32>
    %124 = arith.subf %123, %117 : vector<8x64xf32>
    %125 = arith.mulf %124, %122 : vector<8x64xf32>
    %126 = arith.mulf %117, %99 : vector<8x64xf32>
    %127 = arith.addf %125, %126 : vector<8x64xf32>
    %128 = arith.index_cast %103 : i32 to index
    %c0_45 = arith.constant 0 : index
    %129 = vector.load %arg12[%128, %c0_45] : memref<64x64xf32, #tpu.memory_space<vmem>>, vector<8x64xf32>
    tpu.vector_store %arg12[%128, %c0_45], %127 {strides = array<i32>} : memref<64x64xf32, #tpu.memory_space<vmem>>, vector<8x64xf32>,
    %c4_i32 = arith.constant 4 : i32
    %c8_i32_46 = arith.constant 8 : i32
    %130 = arith.muli %c4_i32, %c8_i32_46 : i32
    %131 = tpu.assume_multiple %130, 8 : i32
    %132 = arith.index_cast %131 : i32 to index
    %c0_47 = arith.constant 0 : index
    %133 = vector.load %arg11[%132, %c0_47] : memref<64x128xf32, #tpu.memory_space<vmem>>, vector<8x128xf32>
    %134 = arith.index_cast %131 : i32 to index
    %c0_48 = arith.constant 0 : index
    %135 = vector.load %arg12[%134, %c0_48] : memref<64x64xf32, #tpu.memory_space<vmem>>, vector<8x64xf32>
    %cst_49 = arith.constant dense<0.000000e+00> : vector<8x192xf32>
    %136 = tpu.matmul %127, %13, %cst_49 {dimension_numbers = #tpu.dot_dimension_numbers<[1], [0], [0], [1], [0, 0, 1, 1], [], []>} : vector<8x64xf32>, vector<64x192xf32>, vector<8x192xf32> -> vector<8x192xf32>
    %137 = vector.extract_strided_slice %136 {offsets = [0, 0], sizes = [8, 128], strides = [1, 1]} : vector<8x192xf32> to vector<8x128xf32>
    %138 = arith.addf %133, %137 : vector<8x128xf32>
    %139 = arith.negf %138 : vector<8x128xf32>
    %140 = math.exp %139 : vector<8x128xf32>
    %cst_50 = arith.constant 1.000000e+00 : f32
    %141 = vector.broadcast %cst_50 : f32 to vector<8x128xf32>
    %142 = arith.addf %141, %140 : vector<8x128xf32>
    %143 = arith.divf %141, %142 : vector<8x128xf32>
    %144 = vector.extract_strided_slice %143 {offsets = [0, 0], sizes = [8, 64], strides = [1, 1]} : vector<8x128xf32> to vector<8x64xf32>
    %145 = vector.extract_strided_slice %143 {offsets = [0, 64], sizes = [8, 64], strides = [1, 1]} : vector<8x128xf32> to vector<8x64xf32>
    %146 = vector.extract_strided_slice %136 {offsets = [0, 128], sizes = [8, 64], strides = [1, 1]} : vector<8x192xf32> to vector<8x64xf32>
    %147 = arith.addf %146, %16 : vector<8x64xf32>
    %148 = arith.mulf %144, %147 : vector<8x64xf32>
    %149 = arith.addf %135, %148 : vector<8x64xf32>
    %150 = math.tanh %149 : vector<8x64xf32>
    %cst_51 = arith.constant 1.000000e+00 : f32
    %151 = vector.broadcast %cst_51 : f32 to vector<8x64xf32>
    %152 = arith.subf %151, %145 : vector<8x64xf32>
    %153 = arith.mulf %152, %150 : vector<8x64xf32>
    %154 = arith.mulf %145, %127 : vector<8x64xf32>
    %155 = arith.addf %153, %154 : vector<8x64xf32>
    %156 = arith.index_cast %131 : i32 to index
    %c0_52 = arith.constant 0 : index
    %157 = vector.load %arg12[%156, %c0_52] : memref<64x64xf32, #tpu.memory_space<vmem>>, vector<8x64xf32>
    tpu.vector_store %arg12[%156, %c0_52], %155 {strides = array<i32>} : memref<64x64xf32, #tpu.memory_space<vmem>>, vector<8x64xf32>,
    %c5_i32 = arith.constant 5 : i32
    %c8_i32_53 = arith.constant 8 : i32
    %158 = arith.muli %c5_i32, %c8_i32_53 : i32
    %159 = tpu.assume_multiple %158, 8 : i32
    %160 = arith.index_cast %159 : i32 to index
    %c0_54 = arith.constant 0 : index
    %161 = vector.load %arg11[%160, %c0_54] : memref<64x128xf32, #tpu.memory_space<vmem>>, vector<8x128xf32>
    %162 = arith.index_cast %159 : i32 to index
    %c0_55 = arith.constant 0 : index
    %163 = vector.load %arg12[%162, %c0_55] : memref<64x64xf32, #tpu.memory_space<vmem>>, vector<8x64xf32>
    %cst_56 = arith.constant dense<0.000000e+00> : vector<8x192xf32>
    %164 = tpu.matmul %155, %13, %cst_56 {dimension_numbers = #tpu.dot_dimension_numbers<[1], [0], [0], [1], [0, 0, 1, 1], [], []>} : vector<8x64xf32>, vector<64x192xf32>, vector<8x192xf32> -> vector<8x192xf32>
    %165 = vector.extract_strided_slice %164 {offsets = [0, 0], sizes = [8, 128], strides = [1, 1]} : vector<8x192xf32> to vector<8x128xf32>
    %166 = arith.addf %161, %165 : vector<8x128xf32>
    %167 = arith.negf %166 : vector<8x128xf32>
    %168 = math.exp %167 : vector<8x128xf32>
    %cst_57 = arith.constant 1.000000e+00 : f32
    %169 = vector.broadcast %cst_57 : f32 to vector<8x128xf32>
    %170 = arith.addf %169, %168 : vector<8x128xf32>
    %171 = arith.divf %169, %170 : vector<8x128xf32>
    %172 = vector.extract_strided_slice %171 {offsets = [0, 0], sizes = [8, 64], strides = [1, 1]} : vector<8x128xf32> to vector<8x64xf32>
    %173 = vector.extract_strided_slice %171 {offsets = [0, 64], sizes = [8, 64], strides = [1, 1]} : vector<8x128xf32> to vector<8x64xf32>
    %174 = vector.extract_strided_slice %164 {offsets = [0, 128], sizes = [8, 64], strides = [1, 1]} : vector<8x192xf32> to vector<8x64xf32>
    %175 = arith.addf %174, %16 : vector<8x64xf32>
    %176 = arith.mulf %172, %175 : vector<8x64xf32>
    %177 = arith.addf %163, %176 : vector<8x64xf32>
    %178 = math.tanh %177 : vector<8x64xf32>
    %cst_58 = arith.constant 1.000000e+00 : f32
    %179 = vector.broadcast %cst_58 : f32 to vector<8x64xf32>
    %180 = arith.subf %179, %173 : vector<8x64xf32>
    %181 = arith.mulf %180, %178 : vector<8x64xf32>
    %182 = arith.mulf %173, %155 : vector<8x64xf32>
    %183 = arith.addf %181, %182 : vector<8x64xf32>
    %184 = arith.index_cast %159 : i32 to index
    %c0_59 = arith.constant 0 : index
    %185 = vector.load %arg12[%184, %c0_59] : memref<64x64xf32, #tpu.memory_space<vmem>>, vector<8x64xf32>
    tpu.vector_store %arg12[%184, %c0_59], %183 {strides = array<i32>} : memref<64x64xf32, #tpu.memory_space<vmem>>, vector<8x64xf32>,
    %c6_i32 = arith.constant 6 : i32
    %c8_i32_60 = arith.constant 8 : i32
    %186 = arith.muli %c6_i32, %c8_i32_60 : i32
    %187 = tpu.assume_multiple %186, 8 : i32
    %188 = arith.index_cast %187 : i32 to index
    %c0_61 = arith.constant 0 : index
    %189 = vector.load %arg11[%188, %c0_61] : memref<64x128xf32, #tpu.memory_space<vmem>>, vector<8x128xf32>
    %190 = arith.index_cast %187 : i32 to index
    %c0_62 = arith.constant 0 : index
    %191 = vector.load %arg12[%190, %c0_62] : memref<64x64xf32, #tpu.memory_space<vmem>>, vector<8x64xf32>
    %cst_63 = arith.constant dense<0.000000e+00> : vector<8x192xf32>
    %192 = tpu.matmul %183, %13, %cst_63 {dimension_numbers = #tpu.dot_dimension_numbers<[1], [0], [0], [1], [0, 0, 1, 1], [], []>} : vector<8x64xf32>, vector<64x192xf32>, vector<8x192xf32> -> vector<8x192xf32>
    %193 = vector.extract_strided_slice %192 {offsets = [0, 0], sizes = [8, 128], strides = [1, 1]} : vector<8x192xf32> to vector<8x128xf32>
    %194 = arith.addf %189, %193 : vector<8x128xf32>
    %195 = arith.negf %194 : vector<8x128xf32>
    %196 = math.exp %195 : vector<8x128xf32>
    %cst_64 = arith.constant 1.000000e+00 : f32
    %197 = vector.broadcast %cst_64 : f32 to vector<8x128xf32>
    %198 = arith.addf %197, %196 : vector<8x128xf32>
    %199 = arith.divf %197, %198 : vector<8x128xf32>
    %200 = vector.extract_strided_slice %199 {offsets = [0, 0], sizes = [8, 64], strides = [1, 1]} : vector<8x128xf32> to vector<8x64xf32>
    %201 = vector.extract_strided_slice %199 {offsets = [0, 64], sizes = [8, 64], strides = [1, 1]} : vector<8x128xf32> to vector<8x64xf32>
    %202 = vector.extract_strided_slice %192 {offsets = [0, 128], sizes = [8, 64], strides = [1, 1]} : vector<8x192xf32> to vector<8x64xf32>
    %203 = arith.addf %202, %16 : vector<8x64xf32>
    %204 = arith.mulf %200, %203 : vector<8x64xf32>
    %205 = arith.addf %191, %204 : vector<8x64xf32>
    %206 = math.tanh %205 : vector<8x64xf32>
    %cst_65 = arith.constant 1.000000e+00 : f32
    %207 = vector.broadcast %cst_65 : f32 to vector<8x64xf32>
    %208 = arith.subf %207, %201 : vector<8x64xf32>
    %209 = arith.mulf %208, %206 : vector<8x64xf32>
    %210 = arith.mulf %201, %183 : vector<8x64xf32>
    %211 = arith.addf %209, %210 : vector<8x64xf32>
    %212 = arith.index_cast %187 : i32 to index
    %c0_66 = arith.constant 0 : index
    %213 = vector.load %arg12[%212, %c0_66] : memref<64x64xf32, #tpu.memory_space<vmem>>, vector<8x64xf32>
    tpu.vector_store %arg12[%212, %c0_66], %211 {strides = array<i32>} : memref<64x64xf32, #tpu.memory_space<vmem>>, vector<8x64xf32>,
    %c7_i32 = arith.constant 7 : i32
    %c8_i32_67 = arith.constant 8 : i32
    %214 = arith.muli %c7_i32, %c8_i32_67 : i32
    %215 = tpu.assume_multiple %214, 8 : i32
    %216 = arith.index_cast %215 : i32 to index
    %c0_68 = arith.constant 0 : index
    %217 = vector.load %arg11[%216, %c0_68] : memref<64x128xf32, #tpu.memory_space<vmem>>, vector<8x128xf32>
    %218 = arith.index_cast %215 : i32 to index
    %c0_69 = arith.constant 0 : index
    %219 = vector.load %arg12[%218, %c0_69] : memref<64x64xf32, #tpu.memory_space<vmem>>, vector<8x64xf32>
    %cst_70 = arith.constant dense<0.000000e+00> : vector<8x192xf32>
    %220 = tpu.matmul %211, %13, %cst_70 {dimension_numbers = #tpu.dot_dimension_numbers<[1], [0], [0], [1], [0, 0, 1, 1], [], []>} : vector<8x64xf32>, vector<64x192xf32>, vector<8x192xf32> -> vector<8x192xf32>
    %221 = vector.extract_strided_slice %220 {offsets = [0, 0], sizes = [8, 128], strides = [1, 1]} : vector<8x192xf32> to vector<8x128xf32>
    %222 = arith.addf %217, %221 : vector<8x128xf32>
    %223 = arith.negf %222 : vector<8x128xf32>
    %224 = math.exp %223 : vector<8x128xf32>
    %cst_71 = arith.constant 1.000000e+00 : f32
    %225 = vector.broadcast %cst_71 : f32 to vector<8x128xf32>
    %226 = arith.addf %225, %224 : vector<8x128xf32>
    %227 = arith.divf %225, %226 : vector<8x128xf32>
    %228 = vector.extract_strided_slice %227 {offsets = [0, 0], sizes = [8, 64], strides = [1, 1]} : vector<8x128xf32> to vector<8x64xf32>
    %229 = vector.extract_strided_slice %227 {offsets = [0, 64], sizes = [8, 64], strides = [1, 1]} : vector<8x128xf32> to vector<8x64xf32>
    %230 = vector.extract_strided_slice %220 {offsets = [0, 128], sizes = [8, 64], strides = [1, 1]} : vector<8x192xf32> to vector<8x64xf32>
    %231 = arith.addf %230, %16 : vector<8x64xf32>
    %232 = arith.mulf %228, %231 : vector<8x64xf32>
    %233 = arith.addf %219, %232 : vector<8x64xf32>
    %234 = math.tanh %233 : vector<8x64xf32>
    %cst_72 = arith.constant 1.000000e+00 : f32
    %235 = vector.broadcast %cst_72 : f32 to vector<8x64xf32>
    %236 = arith.subf %235, %229 : vector<8x64xf32>
    %237 = arith.mulf %236, %234 : vector<8x64xf32>
    %238 = arith.mulf %229, %211 : vector<8x64xf32>
    %239 = arith.addf %237, %238 : vector<8x64xf32>
    %240 = arith.index_cast %215 : i32 to index
    %c0_73 = arith.constant 0 : index
    %241 = vector.load %arg12[%240, %c0_73] : memref<64x64xf32, #tpu.memory_space<vmem>>, vector<8x64xf32>
    tpu.vector_store %arg12[%240, %c0_73], %239 {strides = array<i32>} : memref<64x64xf32, #tpu.memory_space<vmem>>, vector<8x64xf32>,
    %c8_i32_74 = arith.constant 8 : i32
    %c0_75 = arith.constant 0 : index
    %c0_76 = arith.constant 0 : index
    %242 = vector.load %arg12[%c0_75, %c0_76] : memref<64x64xf32, #tpu.memory_space<vmem>>, vector<64x64xf32>
    %c0_77 = arith.constant 0 : index
    %c0_78 = arith.constant 0 : index
    %243 = vector.load %arg8[%c0_77, %c0_78] : memref<64x1xf32, #tpu.memory_space<vmem>>, vector<64x1xf32>
    %cst_79 = arith.constant dense<0.000000e+00> : vector<64x1xf32>
    %244 = tpu.matmul %242, %243, %cst_79 {dimension_numbers = #tpu.dot_dimension_numbers<[1], [0], [0], [1], [0, 0, 1, 1], [], []>} : vector<64x64xf32>, vector<64x1xf32>, vector<64x1xf32> -> vector<64x1xf32>
    %c0_80 = arith.constant 0 : index
    %c0_81 = arith.constant 0 : index
    %245 = vector.load %arg9[%c0_80, %c0_81] : memref<1x1xf32, #tpu.memory_space<vmem>>, vector<1x1xf32>
    %246 = vector.broadcast %245 : vector<1x1xf32> to vector<64x1xf32>
    %247 = arith.addf %244, %246 : vector<64x1xf32>
    %c0_82 = arith.constant 0 : index
    %c0_83 = arith.constant 0 : index
    %248 = vector.load %arg10[%c0_82, %c0_83] : memref<64x1xf32, #tpu.memory_space<vmem>>, vector<64x1xf32>
    tpu.vector_store %arg10[%c0_82, %c0_83], %247 {strides = array<i32>} : memref<64x1xf32, #tpu.memory_space<vmem>>, vector<64x1xf32>,
    return
  }
  func.func @transform_0(%arg0: i32) -> (i32, i32) {
    %c0_i32 = arith.constant 0 : i32
    %c0_i32_0 = arith.constant 0 : i32
    %c0_i32_1 = arith.constant 0 : i32
    return %c0_i32, %c0_i32_0 : i32, i32
  }
  func.func @transform_1(%arg0: i32) -> (i32, i32) {
    %c0_i32 = arith.constant 0 : i32
    %c0_i32_0 = arith.constant 0 : i32
    %c0_i32_1 = arith.constant 0 : i32
    return %c0_i32, %c0_i32_0 : i32, i32
  }
  func.func @transform_2(%arg0: i32) -> (i32, i32) {
    %c0_i32 = arith.constant 0 : i32
    %c0_i32_0 = arith.constant 0 : i32
    %c0_i32_1 = arith.constant 0 : i32
    return %c0_i32, %c0_i32_0 : i32, i32
  }
  func.func @transform_3(%arg0: i32) -> (i32, i32) {
    %c0_i32 = arith.constant 0 : i32
    %c0_i32_0 = arith.constant 0 : i32
    %c0_i32_1 = arith.constant 0 : i32
    return %c0_i32, %c0_i32_0 : i32, i32
  }
  func.func @transform_4(%arg0: i32) -> (i32, i32) {
    %c0_i32 = arith.constant 0 : i32
    %c0_i32_0 = arith.constant 0 : i32
    %c0_i32_1 = arith.constant 0 : i32
    return %c0_i32, %c0_i32_0 : i32, i32
  }
  func.func @transform_5(%arg0: i32) -> (i32, i32) {
    %c0_i32 = arith.constant 0 : i32
    %c0_i32_0 = arith.constant 0 : i32
    %c0_i32_1 = arith.constant 0 : i32
    return %c0_i32, %c0_i32_0 : i32, i32
  }
  func.func @transform_6(%arg0: i32) -> (i32, i32) {
    %c0_i32 = arith.constant 0 : i32
    %c0_i32_0 = arith.constant 0 : i32
    %c0_i32_1 = arith.constant 0 : i32
    return %c0_i32, %c0_i32_0 : i32, i32
  }
  func.func @transform_7(%arg0: i32) -> (i32, i32) {
    %c0_i32 = arith.constant 0 : i32
    %c0_i32_0 = arith.constant 0 : i32
    %c0_i32_1 = arith.constant 0 : i32
    return %c0_i32, %c0_i32_0 : i32, i32
  }
  func.func @transform_8(%arg0: i32) -> (i32, i32) {
    %c0_i32 = arith.constant 0 : i32
    %c0_i32_0 = arith.constant 0 : i32
    %c0_i32_1 = arith.constant 0 : i32
    return %c0_i32, %c0_i32_0 : i32, i32
  }
  func.func @transform_9(%arg0: i32) -> (i32, i32) {
    %c0_i32 = arith.constant 0 : i32
    %c0_i32_0 = arith.constant 0 : i32
    %c0_i32_1 = arith.constant 0 : i32
    return %c0_i32, %c0_i32_0 : i32, i32
  }
}

</mosaic_0001>

<bundles_post_ra>
// kernel: tpu_custom_call.1
= control target key start
LH: loop header
LB: loop body
LE: loop exit
PB: predicated region body
PF: predicated region fallthrough
CT: control target
= control target key end

     0   :  { %vm51_vm0 = vcmask 130048   ;;  %v1648_v38 = vmov 0.0   ;;  %vm303_vm1 = vcmask 523264   ;;  %s1649_s21 = smov 64   ;;  %vm1294_vm2 = vcmask 7168   ;;  %s2050_s2 = inlined_call_operand.vmem [shape: f32[16,64], index: 2, kind: input, shape index: {}]   ;;  %s2051_s0 = inlined_call_operand.vmem [shape: f32[64,16], index: 0, kind: input, shape index: {}]   ;;  %s2052_s3 = inlined_call_operand.vmem [shape: f32[64,192], index: 3, kind: input, shape index: {}]   ;;  %s2053_s1 = inlined_call_operand.vmem [shape: f32[16,128], index: 1, kind: input, shape index: {}]   ;;  %s2054_s5 = inlined_call_operand.vmem [shape: f32[1,64], index: 5, kind: input, shape index: {}]   ;;  %s2055_s4 = inlined_call_operand.vmem [shape: f32[1,128], index: 4, kind: input, shape index: {}]   ;;  %s2056_s6 = inlined_call_operand.vmem [shape: f32[1,64], index: 6, kind: input, shape index: {}]   ;;  %s2057_s7 = inlined_call_operand.vmem [shape: f32[64,1], index: 7, kind: input, shape index: {}]   ;;  %s2058_s8 = inlined_call_operand.<no memory space> [shape: f32[1,1], index: 8, kind: input, shape index: {}]   ;;  %s2059_s9 = inlined_call_operand.vmem [shape: f32[64,1], index: 9, kind: output, shape index: {}]  }
   0x1   :  { %v189_v0 = vld [vmem:[%s2050_s2] sm:$0xff]  ;;  %v190_v1 = vld [vmem:[%s2050_s2 + $0x8] sm:$0xff]  ;;  %v315_v5 = vld [vmem:[%s2052_s3 + $0x18] sm:$0xff] }
   0x2   :  { %v34_v2 = vld [vmem:[%s2051_s0] sm:$0xff]  ;;  %v1450_v3 = vpack.c.bf16 %v190_v1, %v189_v0  ;;  %v313_v4 = vld [vmem:[%s2052_s3 + $0x8] sm:$0xff]  ;;  %v314_v8 = vld [vmem:[%s2052_s3 + $0x10] sm:$0xff] }
   0x3   :  { %1406 = vmatprep.mubr.msk.f32.mxu1 %vm51_vm0, %v34_v2  ;;  %1390 = vmatprep.mubr.msk.f32.mxu0 %vm51_vm0, %v34_v2  ;;  %v1717_v6 = vpack.c.bf16 %v315_v5, %v313_v4  ;;  %v312_v7 = vld [vmem:[%s2052_s3] sm:$0xff]  ;;  %v317_v9 = vld [vmem:[%s2052_s3 + $0x28] sm:$0xff]  ;;  %v319_v10 = vld [vmem:[%s2052_s3 + $0x38] sm:$0xff] }
   0x4   :  { %1451 = vmatprep.subr.bf16.mxu1 %v1450_v3  ;;  %v35_v11 = vld [vmem:[%s2051_s0 + $0x8] sm:$0xff]  ;;  %v1734_v12 = vpack.c.bf16 %v314_v8, %v312_v7  ;;  %v36_v13 = vld [vmem:[%s2051_s0 + $0x10] sm:$0xff]  ;;  %v1740_v14 = vpack.c.bf16 %v319_v10, %v317_v9  ;;  %v316_v15 = vld [vmem:[%s2052_s3 + $0x20] sm:$0xff] }
   0x5   :  { %1453 = vmatpush3.bf16.msra.mxu1 %v1450_v3  ;;  %v318_v16 = vld [vmem:[%s2052_s3 + $0x30] sm:$0xff]  ;;  %v321_v17 = vld [vmem:[%s2052_s3 + $0x48] sm:$0xff]  ;;  %v323_v18 = vld [vmem:[%s2052_s3 + $0x58] sm:$0xff] }
   0x6   :  { %1455 = vmatprep.subr.bf16.mxu1 %v1717_v6  ;;  %v42_v19 = vld [vmem:[%s2053_s1] sm:$0xff]  ;;  %v43_v20 = vld [vmem:[%s2053_s1 + $0x8] sm:$0xff]  ;;  %v37_v22 = vld [vmem:[%s2051_s0 + $0x18] sm:$0xff]  ;;  %v1766_v23 = vpack.c.bf16 %v318_v16, %v316_v15  ;;  %v1772_v25 = vpack.c.bf16 %v323_v18, %v321_v17 }
   0x7   :  { %v1446_v21 = vpack.c.bf16 %v43_v20, %v42_v19  ;;  %v38_v24 = vld [vmem:[%s2051_s0 + $0x20] sm:$0xff]  ;;  %v322_v27 = vld [vmem:[%s2052_s3 + $0x50] sm:$0xff]  ;;  %v325_v28 = vld [vmem:[%s2052_s3 + $0x68] sm:$0xff] }
   0x8   :  { %1407 = vmatmul.mubr.msk.f32.vlgmr.msra.gmra.mrb[0].mxu1 %vm51_vm0, %v35_v11  ;;  %v320_v26 = vld [vmem:[%s2052_s3 + $0x40] sm:$0xff]  ;;  %v327_v29 = vld [vmem:[%s2052_s3 + $0x78] sm:$0xff]  ;;  %v39_v30 = vld [vmem:[%s2051_s0 + $0x28] sm:$0xff] }
   0x9   :  { %1457 = vmatpush1.bf16.msra.mxu1 %v1734_v12  ;;  %1409 = vmatprep.mubr.msk.f32.mxu1 %vm51_vm0, %v36_v13  ;;  %v1793_v31 = vpack.c.bf16 %v322_v27, %v320_v26  ;;  %v40_v32 = vld [vmem:[%s2051_s0 + $0x30] sm:$0xff]  ;;  %v1799_v33 = vpack.c.bf16 %v327_v29, %v325_v28  ;;  %v324_v34 = vld [vmem:[%s2052_s3 + $0x60] sm:$0xff]  ;;  %v41_v36 = vld [vmem:[%s2051_s0 + $0x38] sm:$0xff] }
   0xa   :  { %1459 = vmatprep.subr.bf16.mxu1 %v1740_v14  ;;  %1447 = vmatprep.subr.bf16.mxu0 %v1446_v21  ;;  %v326_v35 = vld [vmem:[%s2052_s3 + $0x70] sm:$0xff]  ;;  %v1316_v39 = vld [vmem:[%s2054_s5] ss:$0 sm:$0xff] }
   0xb   :  { %1449 = vmatpush3.bf16.msra.mxu0 %v1446_v21  ;;  %v1817_v37 = vpack.c.bf16 %v326_v35, %v324_v34  ;;  %v1856_v54 = vld [vmem:[%s2055_s4] ss:$0 sm:$0xff] }
   0xc   :  { %1410 = vmatmul.mubr.msk.f32.gmra.mrb[2].mxu1 %vm51_vm0, %v37_v22  ;;  %1487 = vmatprep.subr.bf16.mxu0 %v1717_v6  ;;  %v1866_v2 = vld [vmem:[%s2056_s6] ss:$0 sm:$0xff] }
   0xd   :  { %1461 = vmatpush1.bf16.msra.mxu1 %v1766_v23  ;;  %1412 = vmatprep.mubr.msk.f32.mxu1 %vm51_vm0, %v38_v24 }
   0xe   :  { %1463 = vmatprep.subr.bf16.mxu1 %v1772_v25  ;;  %1391 = vmatmul.mubr.msk.f32.vlgmr.msra.gmra.mrb[0].mxu0 %vm51_vm0, %v35_v11 }
   0xf   :  { %1489 = vmatpush1.bf16.msra.mxu0 %v1734_v12  ;;  %1393 = vmatprep.mubr.msk.f32.mxu0 %vm51_vm0, %v36_v13 }
  0x10   :  { %1413 = vmatmul.mubr.msk.f32.gmra.mrb[4].mxu1 %vm51_vm0, %v39_v30  ;;  %1491 = vmatprep.subr.bf16.mxu0 %v1740_v14 }
  0x11   :  { %1465 = vmatpush1.bf16.msra.mxu1 %v1793_v31  ;;  %1415 = vmatprep.mubr.msk.f32.mxu1 %vm51_vm0, %v40_v32 }
  0x12   :  { %1467 = vmatprep.subr.bf16.mxu1 %v1799_v33  ;;  %1394 = vmatmul.mubr.msk.f32.gmra.mrb[2].mxu0 %vm51_vm0, %v37_v22 }
  0x13   :  { %1493 = vmatpush1.bf16.msra.mxu0 %v1766_v23  ;;  %1396 = vmatprep.mubr.msk.f32.mxu0 %vm51_vm0, %v38_v24 }
  0x14   :  { %1416 = vmatmul.mubr.msk.f32.gmra.mrb[6].mxu1 %vm51_vm0, %v41_v36  ;;  %1495 = vmatprep.subr.bf16.mxu0 %v1772_v25 }
  0x15   :  { %1469 = vmatpush1.bf16.msra.mxu1 %v1817_v37  ;;  %404 = vmatprep.mubr.f32.mxu1 %v1648_v38 }
  0x16   :  { %1471 = vmatprep.subr.bf16.mxu1 %v1717_v6  ;;  %1397 = vmatmul.mubr.msk.f32.gmra.mrb[4].mxu0 %vm51_vm0, %v39_v30 }
  0x17   :  { %1497 = vmatpush1.bf16.msra.mxu0 %v1793_v31  ;;  %1399 = vmatprep.mubr.msk.f32.mxu0 %vm51_vm0, %v40_v32 }
  0x18   :  { %405 = vmatmul.mubr.f32.vlgmr.msra.gmra.mrb[8].mxu1 %v1648_v38  ;;  %1499 = vmatprep.subr.bf16.mxu0 %v1799_v33 }
  0x19   :  { %1473 = vmatpush1.bf16.msra.mxu1 %v1734_v12  ;;  %505 = vmatprep.mubr.f32.mxu1 %v1648_v38 }
  0x1a   :  { %1475 = vmatprep.subr.bf16.mxu1 %v1740_v14  ;;  %1400 = vmatmul.mubr.msk.f32.gmra.mrb[6].mxu0 %vm51_vm0, %v41_v36 }
  0x1b   :  { %1501 = vmatpush1.bf16.msra.mxu0 %v1817_v37  ;;  %606 = vmatprep.mubr.f32.mxu0 %v1648_v38 }
  0x1c   :  { %1519 = vmatprep.subr.bf16.mxu0 %v1717_v6 }
  0x1d   :  { %1477 = vmatpush1.bf16.msra.mxu1 %v1766_v23 }
  0x1e   :  { %1479 = vmatprep.subr.bf16.mxu1 %v1772_v25 }
  0x21   :  { %1481 = vmatpush1.bf16.msra.mxu1 %v1793_v31 }
  0x22   :  { %1483 = vmatprep.subr.bf16.mxu1 %v1799_v33 }
  0x25   :  { %1485 = vmatpush1.bf16.msra.mxu1 %v1817_v37 }
  0x26   :  { %1503 = vmatprep.subr.bf16.mxu1 %v1717_v6 }
  0xdb   :  { %v1408_v40 = vpop.f32.mrb[0].mxu1 }
  0xdc   :  { %v270_v41 = vadd.f32 %v1408_v40, %v1316_v39  ;;  %v264_v42 = vpop.f32.mrb[1].mxu1 }
  0xdd   :  { %v265_v43 = vadd.f32 %v1316_v39, %v264_v42 }
  0xde   :  { %305 = vst.msk [vmem:[#allocation3 + $0x8] sm:$0xff] %vm303_vm1, %v270_v41 }
  0xdf   :  { %304 = vst.msk [vmem:[#allocation3] sm:$0xff] %vm303_vm1, %v265_v43  ;;  %v1411_v44 = vpop.f32.mrb[2].mxu1 }
  0xe0   :  { %v280_v45 = vadd.f32 %v1411_v44, %v1316_v39  ;;  %v274_v46 = vpop.f32.mrb[3].mxu1 }
  0xe1   :  { %v275_v47 = vadd.f32 %v1316_v39, %v274_v46  ;;  %v1392_v48 = vpop.f32.mrb[0].mxu0 }
  0xe2   :  { %307 = vst.msk [vmem:[#allocation3 + $0x18] sm:$0xff] %vm303_vm1, %v280_v45  ;;  %v142_v49 = vpop.f32.mrb[1].mxu0  ;;  %v148_v18 = vadd.f32 %v1392_v48, %v1856_v54 }
  0xe3   :  { %306 = vst.msk [vmem:[#allocation3 + $0x10] sm:$0xff] %vm303_vm1, %v275_v47  ;;  %v1414_v50 = vpop.f32.mrb[4].mxu1  ;;  %v143_v58 = vadd.f32 %v1856_v54, %v142_v49 }
  0xe4   :  { %v290_v51 = vadd.f32 %v1414_v50, %v1316_v39  ;;  %v284_v52 = vpop.f32.mrb[5].mxu1 }
  0xe5   :  { %v285_v53 = vadd.f32 %v1316_v39, %v284_v52  ;;  %v438_v30 = vld [vmem:[#allocation3 + $0x8] sm:$0xff]  ;;  %v1395_v35 = vpop.f32.mrb[2].mxu0 }
  0xe6   :  { %309 = vst.msk [vmem:[#allocation3 + $0x28] sm:$0xff] %vm303_vm1, %v290_v51  ;;  %v336_v7 = vld [vmem:[#allocation3] sm:$0xff]  ;;  %v152_v36 = vpop.f32.mrb[3].mxu0 }
  0xe7   :  { %308 = vst.msk [vmem:[#allocation3 + $0x20] sm:$0xff] %vm303_vm1, %v285_v53  ;;  %v1417_v55 = vpop.f32.mrb[6].mxu1  ;;  %v153_v49 = vadd.f32 %v1856_v54, %v152_v36 }
  0xe8   :  { %v300_v56 = vadd.f32 %v1417_v55, %v1316_v39  ;;  %v294_v57 = vpop.f32.mrb[7].mxu1 }
  0xe9   :  { %v295_v59 = vadd.f32 %v1316_v39, %v294_v57  ;;  %v1885_v39 = vpop.f32.mrb[4].mxu0 }
  0xea   :  { %311 = vst.msk [vmem:[#allocation3 + $0x38] sm:$0xff] %vm303_vm1, %v300_v56  ;;  %v1887_v40 = vpop.f32.mrb[5].mxu0 }
  0xeb   :  { %310 = vst.msk [vmem:[#allocation3 + $0x30] sm:$0xff] %vm303_vm1, %v295_v59  ;;  %v406_v60 = vpop.f32.mrb[8].mxu1 }
  0xec   :  { %v411_v61 = vadd.f32 %v406_v60, %v143_v58  ;;  %v408_v62 = vpop.f32.mrb[9].mxu1  ;;  %v539_v60 = vld [vmem:[#allocation3 + $0x10] sm:$0xff] }
  0xed   :  { %v418_v3 = vadd.f32 %v1866_v2, %v408_v62  ;;  %v1889_v41 = vpop.f32.mrb[6].mxu0 }
  0xee   :  { %v1326_v63 = vmul.f32 -1.442695, %v411_v61  ;;  %v1891_v42 = vpop.f32.mrb[7].mxu0 }
  0xf0   :  { %1600 = vpow2.f32 %v1326_v63 }
  0xfa   :  { %v1601_v0 = vpop.eup %1600 }
  0xfb   :  { %v415_v1 = vadd.f32 1.0, %v1601_v0 }
  0xfd   :  { %1602 = vrcp.f32 %v415_v1 }
 0x107   :  { %v1603_v4 = vpop.eup %1602 }
 0x108   :  { %v419_v5 = vmul.f32 %v1603_v4, %v418_v3  ;;  %v422_v10 = vsub.f32 1.0, %v1603_v4  ;;  %v428_v13 = vmul.f32 0.0, %v1603_v4 }
 0x10a   :  { %v420_v8 = vadd.f32 %v419_v5, %v336_v7  ;;  %v158_v7 = vadd.f32 %v1395_v35, %v1856_v54 }
 0x10c   :  { %1604 = vtanh.f32 %v420_v8 }
 0x116   :  { %v1605_v9 = vpop.eup %1604 }
 0x117   :  { %424 = vrot.lane.b32.xlu0 %v1605_v9, %s1649_s21 }
 0x189   :  { %v425_v11 = vpop.permute.xlu0 %424 }
 0x18a   :  { %v427_v15 = vmul.f32 %v425_v11, %v422_v10 }
 0x18c   :  { %v429_v16 = vadd.f32 %v428_v13, %v427_v15 }
 0x18e   :  { %431 = vrot.lane.b32.xlu0 %v429_v16, %s1649_s21 }
 0x200   :  { %v432_v17 = vpop.permute.xlu0 %431 }
 0x201   :  { %434 = vst.msk [vmem:[#allocation3] sm:$0xff] %vm303_vm1, %v432_v17  ;;  %1327 = vmatmul.mubr.msk.f32.vlgmr.msra.gmra.mrb[10].mxu1 %vm303_vm1, %v432_v17 }
 0x202   :  { %1505 = vmatpush1.bf16.msra.mxu1 %v1734_v12  ;;  %707 = vmatprep.mubr.f32.mxu1 %v1648_v38 }
 0x203   :  { %1507 = vmatprep.subr.bf16.mxu1 %v1740_v14 }
 0x206   :  { %1509 = vmatpush1.bf16.msra.mxu1 %v1766_v23 }
 0x207   :  { %1511 = vmatprep.subr.bf16.mxu1 %v1772_v25 }
 0x20a   :  { %1513 = vmatpush1.bf16.msra.mxu1 %v1793_v31 }
 0x20b   :  { %1515 = vmatprep.subr.bf16.mxu1 %v1799_v33 }
 0x20e   :  { %1517 = vmatpush1.bf16.msra.mxu1 %v1817_v37 }
 0x20f   :  { %1535 = vmatprep.subr.bf16.mxu1 %v1717_v6 }
 0x2d4   :  { %v507_v19 = vpop.f32.mrb[10].mxu1 }
 0x2d5   :  { %v512_v20 = vadd.f32 %v507_v19, %v148_v18  ;;  %v509_v21 = vpop.f32.mrb[11].mxu1  ;;  %v640_v19 = vld [vmem:[#allocation3 + $0x18] sm:$0xff] }
 0x2d6   :  { %v519_v27 = vadd.f32 %v1866_v2, %v509_v21 }
 0x2d7   :  { %v1328_v22 = vmul.f32 -1.442695, %v512_v20 }
 0x2d9   :  { %1606 = vpow2.f32 %v1328_v22 }
 0x2e3   :  { %v1607_v24 = vpop.eup %1606 }
 0x2e4   :  { %v516_v26 = vadd.f32 1.0, %v1607_v24 }
 0x2e6   :  { %1608 = vrcp.f32 %v516_v26 }
 0x2f0   :  { %v1609_v28 = vpop.eup %1608 }
 0x2f1   :  { %v520_v29 = vmul.f32 %v1609_v28, %v519_v27  ;;  %v523_v43 = vsub.f32 1.0, %v1609_v28  ;;  %v529_v45 = vmul.f32 %v1609_v28, %v429_v16 }
 0x2f3   :  { %v521_v32 = vadd.f32 %v520_v29, %v438_v30  ;;  %v163_v29 = vadd.f32 %v1856_v54, %v1887_v40 }
 0x2f5   :  { %1610 = vtanh.f32 %v521_v32 }
 0x2ff   :  { %v1611_v34 = vpop.eup %1610 }
 0x300   :  { %525 = vrot.lane.b32.xlu1 %v1611_v34, %s1649_s21 }
 0x372   :  { %v526_v44 = vpop.permute.xlu1 %525 }
 0x373   :  { %v528_v46 = vmul.f32 %v526_v44, %v523_v43 }
 0x375   :  { %v530_v47 = vadd.f32 %v529_v45, %v528_v46 }
 0x377   :  { %532 = vrot.lane.b32.xlu1 %v530_v47, %s1649_s21 }
 0x3e9   :  { %v533_v48 = vpop.permute.xlu1 %532 }
 0x3ea   :  { %535 = vst.msk [vmem:[#allocation3 + $0x8] sm:$0xff] %vm303_vm1, %v533_v48  ;;  %1329 = vmatmul.mubr.msk.f32.vlgmr.msra.gmra.mrb[8].mxu0 %vm303_vm1, %v533_v48 }
 0x3eb   :  { %1521 = vmatpush1.bf16.msra.mxu0 %v1734_v12  ;;  %808 = vmatprep.mubr.f32.mxu0 %v1648_v38 }
 0x3ec   :  { %1523 = vmatprep.subr.bf16.mxu0 %v1740_v14 }
 0x3ef   :  { %1525 = vmatpush1.bf16.msra.mxu0 %v1766_v23 }
 0x3f0   :  { %1527 = vmatprep.subr.bf16.mxu0 %v1772_v25 }
 0x3f3   :  { %1529 = vmatpush1.bf16.msra.mxu0 %v1793_v31 }
 0x3f4   :  { %1531 = vmatprep.subr.bf16.mxu0 %v1799_v33 }
 0x3f7   :  { %1533 = vmatpush1.bf16.msra.mxu0 %v1817_v37 }
 0x3f8   :  { %1551 = vmatprep.subr.bf16.mxu0 %v1717_v6 }
 0x4bd   :  { %v608_v50 = vpop.f32.mrb[8].mxu0 }
 0x4be   :  { %v613_v51 = vadd.f32 %v608_v50, %v153_v49  ;;  %v610_v52 = vpop.f32.mrb[9].mxu0 }
 0x4bf   :  { %v620_v57 = vadd.f32 %v1866_v2, %v610_v52 }
 0x4c0   :  { %v1330_v53 = vmul.f32 -1.442695, %v613_v51 }
 0x4c2   :  { %1612 = vpow2.f32 %v1330_v53 }
 0x4cc   :  { %v1613_v55 = vpop.eup %1612 }
 0x4cd   :  { %v617_v56 = vadd.f32 1.0, %v1613_v55 }
 0x4cf   :  { %1614 = vrcp.f32 %v617_v56  ;;  %v168_v56 = vadd.f32 %v1885_v39, %v1856_v54 }
 0x4d9   :  { %v1615_v58 = vpop.eup %1614 }
 0x4da   :  { %v621_v59 = vmul.f32 %v1615_v58, %v620_v57  ;;  %v624_v63 = vsub.f32 1.0, %v1615_v58  ;;  %v630_v1 = vmul.f32 %v1615_v58, %v530_v47  ;;  %v741_v47 = vld [vmem:[#allocation3 + $0x20] sm:$0xff] }
 0x4dc   :  { %v622_v61 = vadd.f32 %v621_v59, %v539_v60 }
 0x4de   :  { %1616 = vtanh.f32 %v622_v61 }
 0x4e8   :  { %v1617_v62 = vpop.eup %1616 }
 0x4e9   :  { %626 = vrot.lane.b32.xlu0 %v1617_v62, %s1649_s21 }
 0x55b   :  { %v627_v0 = vpop.permute.xlu0 %626 }
 0x55c   :  { %v629_v3 = vmul.f32 %v627_v0, %v624_v63 }
 0x55e   :  { %v631_v4 = vadd.f32 %v630_v1, %v629_v3 }
 0x560   :  { %633 = vrot.lane.b32.xlu1 %v631_v4, %s1649_s21 }
 0x5d2   :  { %v634_v5 = vpop.permute.xlu1 %633 }
 0x5d3   :  { %636 = vst.msk [vmem:[#allocation3 + $0x10] sm:$0xff] %vm303_vm1, %v634_v5  ;;  %1331 = vmatmul.mubr.msk.f32.vlgmr.msra.gmra.mrb[12].mxu1 %vm303_vm1, %v634_v5  ;;  %v1152_v5 = vld [vmem:[%s2057_s7 + $0x10] sm:$0xff] }
 0x5d4   :  { %1537 = vmatpush1.bf16.msra.mxu1 %v1734_v12  ;;  %909 = vmatprep.mubr.f32.mxu1 %v1648_v38 }
 0x5d5   :  { %1539 = vmatprep.subr.bf16.mxu1 %v1740_v14 }
 0x5d8   :  { %1541 = vmatpush1.bf16.msra.mxu1 %v1766_v23 }
 0x5d9   :  { %1543 = vmatprep.subr.bf16.mxu1 %v1772_v25 }
 0x5dc   :  { %1545 = vmatpush1.bf16.msra.mxu1 %v1793_v31 }
 0x5dd   :  { %1547 = vmatprep.subr.bf16.mxu1 %v1799_v33 }
 0x5e0   :  { %1549 = vmatpush1.bf16.msra.mxu1 %v1817_v37 }
 0x5e1   :  { %1567 = vmatprep.subr.bf16.mxu1 %v1717_v6 }
 0x6a6   :  { %v709_v8 = vpop.f32.mrb[12].mxu1 }
 0x6a7   :  { %v714_v9 = vadd.f32 %v709_v8, %v158_v7  ;;  %v711_v10 = vpop.f32.mrb[13].mxu1  ;;  %v1153_v7 = vld [vmem:[%s2057_s7 + $0x18] sm:$0xff] }
 0x6a8   :  { %v721_v16 = vadd.f32 %v1866_v2, %v711_v10  ;;  %v1586_v8 = vpack.c.bf16 %v1153_v7, %v1152_v5  ;;  %v1154_v10 = vld [vmem:[%s2057_s7 + $0x20] sm:$0xff] }
 0x6a9   :  { %v1332_v11 = vmul.f32 -1.442695, %v714_v9 }
 0x6ab   :  { %1618 = vpow2.f32 %v1332_v11  ;;  %v1155_v11 = vld [vmem:[%s2057_s7 + $0x28] sm:$0xff] }
 0x6b5   :  { %v1619_v13 = vpop.eup %1618 }
 0x6b6   :  { %v718_v15 = vadd.f32 1.0, %v1619_v13  ;;  %v1142_v13 = vld [vmem:[#allocation3] sm:$0xff] }
 0x6b8   :  { %1620 = vrcp.f32 %v718_v15  ;;  %v1590_v15 = vpack.c.bf16 %v1155_v11, %v1154_v10 }
 0x6c2   :  { %v1621_v17 = vpop.eup %1620 }
 0x6c3   :  { %v722_v18 = vmul.f32 %v1621_v17, %v721_v16  ;;  %v725_v6 = vsub.f32 1.0, %v1621_v17  ;;  %v731_v24 = vmul.f32 %v1621_v17, %v631_v4  ;;  %v1156_v16 = vld [vmem:[%s2057_s7 + $0x30] sm:$0xff]  ;;  %v1157_v17 = vld [vmem:[%s2057_s7 + $0x38] sm:$0xff] }
 0x6c5   :  { %v723_v20 = vadd.f32 %v722_v18, %v640_v19  ;;  %v1594_v18 = vpack.c.bf16 %v1157_v17, %v1156_v16  ;;  %v1143_v19 = vld [vmem:[#allocation3 + $0x8] sm:$0xff] }
 0x6c7   :  { %1622 = vtanh.f32 %v723_v20  ;;  %v1144_v20 = vld [vmem:[#allocation3 + $0x10] sm:$0xff] }
 0x6d1   :  { %v1623_v21 = vpop.eup %1622 }
 0x6d2   :  { %727 = vrot.lane.b32.xlu0 %v1623_v21, %s1649_s21 }
 0x744   :  { %v728_v22 = vpop.permute.xlu0 %727 }
 0x745   :  { %v730_v26 = vmul.f32 %v728_v22, %v725_v6 }
 0x747   :  { %v732_v27 = vadd.f32 %v731_v24, %v730_v26  ;;  %v14_v24 = vstv %s2058_s8  ;;  %v173_v26 = vadd.f32 %v1856_v54, %v1891_v42 }
 0x748   :  { %15 = vst [vmem:[#allocation4] sm:$0x1] %v14_v24 }
 0x749   :  { %734 = vrot.lane.b32.xlu1 %v732_v27, %s1649_s21 }
 0x7bb   :  { %v735_v28 = vpop.permute.xlu1 %734 }
 0x7bc   :  { %737 = vst.msk [vmem:[#allocation3 + $0x18] sm:$0xff] %vm303_vm1, %v735_v28  ;;  %1333 = vmatmul.mubr.msk.f32.vlgmr.msra.gmra.mrb[10].mxu0 %vm303_vm1, %v735_v28 }
 0x7bd   :  { %1553 = vmatpush1.bf16.msra.mxu0 %v1734_v12  ;;  %1010 = vmatprep.mubr.f32.mxu0 %v1648_v38 }
 0x7be   :  { %1555 = vmatprep.subr.bf16.mxu0 %v1740_v14 }
 0x7c1   :  { %1557 = vmatpush1.bf16.msra.mxu0 %v1766_v23 }
 0x7c2   :  { %1559 = vmatprep.subr.bf16.mxu0 %v1772_v25 }
 0x7c3   :  { %v1145_v21 = vld [vmem:[#allocation3 + $0x18] sm:$0xff] }
 0x7c5   :  { %1561 = vmatpush1.bf16.msra.mxu0 %v1793_v31 }
 0x7c6   :  { %1563 = vmatprep.subr.bf16.mxu0 %v1799_v33 }
 0x7c9   :  { %1565 = vmatpush1.bf16.msra.mxu0 %v1817_v37 }
 0x88f   :  { %v810_v30 = vpop.f32.mrb[10].mxu0 }
 0x890   :  { %v815_v32 = vadd.f32 %v810_v30, %v163_v29  ;;  %v812_v34 = vpop.f32.mrb[11].mxu0 }
 0x891   :  { %v822_v44 = vadd.f32 %v1866_v2, %v812_v34 }
 0x892   :  { %v1334_v35 = vmul.f32 -1.442695, %v815_v32  ;;  %v1994_v32 = vld [vmem:[#allocation4] ss:$0 sm:$0xff] }
 0x894   :  { %1624 = vpow2.f32 %v1334_v35 }
 0x89e   :  { %v1625_v36 = vpop.eup %1624 }
 0x89f   :  { %v819_v43 = vadd.f32 1.0, %v1625_v36 }
 0x8a1   :  { %1626 = vrcp.f32 %v819_v43 }
 0x8ab   :  { %v1627_v45 = vpop.eup %1626 }
 0x8ac   :  { %v823_v46 = vmul.f32 %v1627_v45, %v822_v44  ;;  %v826_v50 = vsub.f32 1.0, %v1627_v45  ;;  %v832_v51 = vmul.f32 %v1627_v45, %v732_v27 }
 0x8ae   :  { %v824_v48 = vadd.f32 %v823_v46, %v741_v47 }
 0x8b0   :  { %1628 = vtanh.f32 %v824_v48 }
 0x8ba   :  { %v1629_v49 = vpop.eup %1628 }
 0x8bb   :  { %828 = vrot.lane.b32.xlu0 %v1629_v49, %s1649_s21 }
 0x92d   :  { %v829_v40 = vpop.permute.xlu0 %828 }
 0x92e   :  { %v831_v52 = vmul.f32 %v829_v40, %v826_v50 }
 0x930   :  { %v833_v53 = vadd.f32 %v832_v51, %v831_v52 }
 0x932   :  { %835 = vrot.lane.b32.xlu1 %v833_v53, %s1649_s21 }
 0x9a4   :  { %v836_v55 = vpop.permute.xlu1 %835 }
 0x9a5   :  { %838 = vst.msk [vmem:[#allocation3 + $0x20] sm:$0xff] %vm303_vm1, %v836_v55  ;;  %1335 = vmatmul.mubr.msk.f32.vlgmr.msra.gmra.mrb[14].mxu1 %vm303_vm1, %v836_v55 }
 0x9a6   :  { %1569 = vmatpush1.bf16.msra.mxu1 %v1734_v12  ;;  %1111 = vmatprep.mubr.f32.mxu1 %v1648_v38 }
 0x9a7   :  { %1571 = vmatprep.subr.bf16.mxu1 %v1740_v14 }
 0x9aa   :  { %1573 = vmatpush1.bf16.msra.mxu1 %v1766_v23 }
 0x9ab   :  { %1575 = vmatprep.subr.bf16.mxu1 %v1772_v25 }
 0x9ac   :  { %v1146_v6 = vld [vmem:[#allocation3 + $0x20] sm:$0xff] }
 0x9ae   :  { %1577 = vmatpush1.bf16.msra.mxu1 %v1793_v31  ;;  %v842_v31 = vld [vmem:[#allocation3 + $0x28] sm:$0xff] }
 0x9af   :  { %1579 = vmatprep.subr.bf16.mxu1 %v1799_v33  ;;  %v1150_v33 = vld [vmem:[%s2057_s7] sm:$0xff] }
 0x9b2   :  { %1581 = vmatpush1.bf16.msra.mxu1 %v1817_v37  ;;  %v1151_v37 = vld [vmem:[%s2057_s7 + $0x8] sm:$0xff] }
 0x9b3   :  { %v1582_v39 = vpack.c.bf16 %v1151_v37, %v1150_v33 }
 0x9b5   :  { %1583 = vmatprep.subr.bf16.mxu0 %v1582_v39 }
 0xa78   :  { %v911_v57 = vpop.f32.mrb[14].mxu1 }
 0xa79   :  { %v916_v58 = vadd.f32 %v911_v57, %v168_v56  ;;  %v913_v12 = vpop.f32.mrb[15].mxu1  ;;  %v943_v56 = vld [vmem:[#allocation3 + $0x30] sm:$0xff] }
 0xa7a   :  { %v923_v23 = vadd.f32 %v1866_v2, %v913_v12 }
 0xa7b   :  { %v1336_v59 = vmul.f32 -1.442695, %v916_v58 }
 0xa7d   :  { %1630 = vpow2.f32 %v1336_v59 }
 0xa87   :  { %v1631_v38 = vpop.eup %1630 }
 0xa88   :  { %v920_v14 = vadd.f32 1.0, %v1631_v38 }
 0xa8a   :  { %1632 = vrcp.f32 %v920_v14 }
 0xa94   :  { %v1633_v25 = vpop.eup %1632 }
 0xa95   :  { %v924_v60 = vmul.f32 %v1633_v25, %v923_v23  ;;  %v927_v63 = vsub.f32 1.0, %v1633_v25  ;;  %v933_v1 = vmul.f32 %v1633_v25, %v833_v53 }
 0xa97   :  { %v925_v61 = vadd.f32 %v924_v60, %v842_v31  ;;  %v178_v31 = vadd.f32 %v1889_v41, %v1856_v54 }
 0xa99   :  { %1634 = vtanh.f32 %v925_v61 }
 0xaa3   :  { %v1635_v62 = vpop.eup %1634 }
 0xaa4   :  { %929 = vrot.lane.b32.xlu0 %v1635_v62, %s1649_s21 }
 0xb16   :  { %v930_v0 = vpop.permute.xlu0 %929 }
 0xb17   :  { %v932_v3 = vmul.f32 %v930_v0, %v927_v63 }
 0xb19   :  { %v1959_v4 = vadd.f32 %v933_v1, %v932_v3 }
 0xb1b   :  { %936 = vrot.lane.b32.xlu1 %v1959_v4, %s1649_s21 }
 0xb8d   :  { %v937_v9 = vpop.permute.xlu1 %936 }
 0xb8e   :  { %939 = vst.msk [vmem:[#allocation3 + $0x28] sm:$0xff] %vm303_vm1, %v937_v9  ;;  %1337 = vmatmul.mubr.msk.f32.vlgmr.msra.gmra.mrb[12].mxu0 %vm303_vm1, %v937_v9 }
 0xb8f   :  { %1585 = vmatpush3.bf16.msra.mxu0 %v1582_v39  ;;  %1434 = vmatprep.mubr.msk.f32.mxu0 %vm303_vm1, %v1142_v13 }
 0xb90   :  { %1587 = vmatprep.subr.bf16.mxu0 %v1586_v8 }
 0xb93   :  { %1589 = vmatpush3.bf16.msra.mxu0 %v1586_v8 }
 0xb94   :  { %1591 = vmatprep.subr.bf16.mxu0 %v1590_v15 }
 0xb95   :  { %v1147_v22 = vld [vmem:[#allocation3 + $0x28] sm:$0xff] }
 0xb97   :  { %1593 = vmatpush3.bf16.msra.mxu0 %v1590_v15 }
 0xb98   :  { %1595 = vmatprep.subr.bf16.mxu0 %v1594_v18 }
 0xb9b   :  { %1597 = vmatpush3.bf16.msra.mxu0 %v1594_v18 }
 0xb9e   :  { %1435 = vmatmul.mubr.msk.f32.vlgmr.msra.gmra.mrb[14].mxu0 %vm303_vm1, %v1143_v19 }
 0xb9f   :  { %1437 = vmatprep.mubr.msk.f32.mxu0 %vm303_vm1, %v1144_v20 }
 0xba2   :  { %1438 = vmatmul.mubr.msk.f32.gmra.mrb[16].mxu0 %vm303_vm1, %v1145_v21 }
 0xba3   :  { %1440 = vmatprep.mubr.msk.f32.mxu0 %vm303_vm1, %v1146_v6 }
 0xba6   :  { %1441 = vmatmul.mubr.msk.f32.gmra.mrb[18].mxu0 %vm303_vm1, %v1147_v22 }
 0xc61   :  { %v1012_v27 = vpop.f32.mrb[12].mxu0 }
 0xc62   :  { %v1017_v28 = vadd.f32 %v1012_v27, %v173_v26  ;;  %v1014_v29 = vpop.f32.mrb[13].mxu0 }
 0xc63   :  { %v1024_v52 = vadd.f32 %v1866_v2, %v1014_v29 }
 0xc64   :  { %v1338_v30 = vmul.f32 -1.442695, %v1017_v28 }
 0xc66   :  { %1636 = vpow2.f32 %v1338_v30 }
 0xc70   :  { %v1637_v34 = vpop.eup %1636 }
 0xc71   :  { %v1021_v35 = vadd.f32 1.0, %v1637_v34  ;;  %v1436_v36 = vpop.f32.mrb[14].mxu0 }
 0xc72   :  { %v1261_v43 = vadd.f32 %v1436_v36, %v1994_v32  ;;  %v1255_v44 = vpop.f32.mrb[15].mxu0 }
 0xc73   :  { %1638 = vrcp.f32 %v1021_v35  ;;  %v1256_v45 = vadd.f32 %v1994_v32, %v1255_v44 }
 0xc74   :  { %1296 = vst.msk [vmem:[%s2059_s9 + $0x8] sm:$0xff] %vm1294_vm2, %v1261_v43 }
 0xc75   :  { %1295 = vst.msk [vmem:[%s2059_s9] sm:$0xff] %vm1294_vm2, %v1256_v45  ;;  %v1439_v42 = vpop.f32.mrb[16].mxu0 }
 0xc76   :  { %v1271_v46 = vadd.f32 %v1439_v42, %v1994_v32  ;;  %v1265_v47 = vpop.f32.mrb[17].mxu0 }
 0xc77   :  { %v1266_v48 = vadd.f32 %v1994_v32, %v1265_v47 }
 0xc78   :  { %1298 = vst.msk [vmem:[%s2059_s9 + $0x18] sm:$0xff] %vm1294_vm2, %v1271_v46 }
 0xc79   :  { %1297 = vst.msk [vmem:[%s2059_s9 + $0x10] sm:$0xff] %vm1294_vm2, %v1266_v48  ;;  %v1442_v49 = vpop.f32.mrb[18].mxu0 }
 0xc7a   :  { %v1281_v50 = vadd.f32 %v1442_v49, %v1994_v32  ;;  %v1275_v40 = vpop.f32.mrb[19].mxu0 }
 0xc7b   :  { %v1276_v51 = vadd.f32 %v1994_v32, %v1275_v40 }
 0xc7c   :  { %1300 = vst.msk [vmem:[%s2059_s9 + $0x28] sm:$0xff] %vm1294_vm2, %v1281_v50 }
 0xc7d   :  { %v1639_v53 = vpop.eup %1638  ;;  %1299 = vst.msk [vmem:[%s2059_s9 + $0x20] sm:$0xff] %vm1294_vm2, %v1276_v51 }
 0xc7e   :  { %v1025_v55 = vmul.f32 %v1639_v53, %v1024_v52  ;;  %v1028_v12 = vsub.f32 1.0, %v1639_v53  ;;  %v1034_v38 = vmul.f32 %v1639_v53, %v1959_v4  ;;  %v1044_v4 = vld [vmem:[#allocation3 + $0x38] sm:$0xff] }
 0xc80   :  { %v1026_v57 = vadd.f32 %v1025_v55, %v943_v56 }
 0xc82   :  { %1640 = vtanh.f32 %v1026_v57 }
 0xc8c   :  { %v1641_v58 = vpop.eup %1640 }
 0xc8d   :  { %1030 = vrot.lane.b32.xlu0 %v1641_v58, %s1649_s21 }
 0xcff   :  { %v1031_v59 = vpop.permute.xlu0 %1030 }
 0xd00   :  { %v1033_v14 = vmul.f32 %v1031_v59, %v1028_v12 }
 0xd02   :  { %v1035_v23 = vadd.f32 %v1034_v38, %v1033_v14 }
 0xd04   :  { %1037 = vrot.lane.b32.xlu1 %v1035_v23, %s1649_s21 }
 0xd76   :  { %v1038_v25 = vpop.permute.xlu1 %1037 }
 0xd77   :  { %1040 = vst.msk [vmem:[#allocation3 + $0x30] sm:$0xff] %vm303_vm1, %v1038_v25  ;;  %1339 = vmatmul.mubr.msk.f32.vlgmr.msra.gmra.mrb[16].mxu1 %vm303_vm1, %v1038_v25 }
 0xd7e   :  { %v1148_v60 = vld [vmem:[#allocation3 + $0x30] sm:$0xff] }
 0xd7f   :  { %1443 = vmatprep.mubr.msk.f32.mxu0 %vm303_vm1, %v1148_v60 }
 0xe4a   :  { %v1113_v61 = vpop.f32.mrb[16].mxu1 }
 0xe4b   :  { %v1118_v33 = vadd.f32 %v1113_v61, %v178_v31  ;;  %v1115_v37 = vpop.f32.mrb[17].mxu1 }
 0xe4c   :  { %v1125_v0 = vadd.f32 %v1866_v2, %v1115_v37 }
 0xe4d   :  { %v1340_v39 = vmul.f32 -1.442695, %v1118_v33 }
 0xe4f   :  { %1642 = vpow2.f32 %v1340_v39 }
 0xe59   :  { %v1643_v62 = vpop.eup %1642 }
 0xe5a   :  { %v1122_v63 = vadd.f32 1.0, %v1643_v62 }
 0xe5c   :  { %1644 = vrcp.f32 %v1122_v63 }
 0xe66   :  { %v1645_v1 = vpop.eup %1644 }
 0xe67   :  { %v1126_v3 = vmul.f32 %v1645_v1, %v1125_v0  ;;  %v1129_v8 = vsub.f32 1.0, %v1645_v1  ;;  %v1135_v41 = vmul.f32 %v1645_v1, %v1035_v23 }
 0xe69   :  { %v1127_v5 = vadd.f32 %v1126_v3, %v1044_v4 }
 0xe6b   :  { %1646 = vtanh.f32 %v1127_v5 }
 0xe75   :  { %v1647_v7 = vpop.eup %1646 }
 0xe76   :  { %1131 = vrot.lane.b32.xlu0 %v1647_v7, %s1649_s21 }
 0xee8   :  { %v1132_v54 = vpop.permute.xlu0 %1131 }
 0xee9   :  { %v1134_v9 = vmul.f32 %v1132_v54, %v1129_v8 }
 0xeeb   :  { %v1136_v10 = vadd.f32 %v1135_v41, %v1134_v9 }
 0xeed   :  { %1138 = vrot.lane.b32.xlu1 %v1136_v10, %s1649_s21 }
 0xf5f   :  { %v1139_v11 = vpop.permute.xlu1 %1138 }
 0xf60   :  { %1141 = vst.msk [vmem:[#allocation3 + $0x38] sm:$0xff] %vm303_vm1, %v1139_v11 }
 0xf67   :  { %v1149_v13 = vld [vmem:[#allocation3 + $0x38] sm:$0xff] }
 0xf68   :  { %1444 = vmatmul.mubr.msk.f32.gmra.mrb[20].mxu0 %vm303_vm1, %v1149_v13 }
0x103b   :  { %v1445_v2 = vpop.f32.mrb[20].mxu0 }
0x103c   :  { %v1291_v15 = vadd.f32 %v1445_v2, %v1994_v32  ;;  %v1285_v16 = vpop.f32.mrb[21].mxu0 }
0x103d   :  { %v1286_v17 = vadd.f32 %v1994_v32, %v1285_v16 }
0x103e   :  { %1302 = vst.msk [vmem:[%s2059_s9 + $0x38] sm:$0xff] %vm1294_vm2, %v1291_v15 }
0x103f   :  { %1301 = vst.msk [vmem:[%s2059_s9 + $0x30] sm:$0xff] %vm1294_vm2, %v1286_v17 }

</bundles_post_ra>
